<compile_context>
chip_gen: v5e
topology: v5e:2x2
jax: 0.10.0
libtpu: 0.0.40
codegen_flags: <defaults>
</compile_context>

<pallas_src>
import jax
import jax.numpy as jnp
from jax.experimental import pallas as pl
from jax.experimental.pallas import tpu as pltpu


def _round_up(n, m):
    return ((n + m - 1) // m) * m


def state_value_kernel(xt_ref, w1_ref, b1_ref, w2_ref, b2_ref, w3_ref, b3_ref,
                       o_ref):
    xt = xt_ref[...]                     # (4, TB)  f32, batch on lanes
    w1 = w1_ref[...]                     # (128, 4) f32, PyTorch (out, in) layout
    tb = xt.shape[1]

    # ---- affine1 + ReLU.  K=4 is a degenerate MXU shape -> 4 unrolled VPU
    #      broadcast multiply-adds accumulated on top of the bias.
    h1 = jnp.broadcast_to(b1_ref[...], (w1.shape[0], tb))        # (128, TB)
    for k in range(4):                                           # static unroll
        h1 = h1 + w1[:, k:k + 1] * xt[k:k + 1, :]
    h1 = jnp.maximum(h1, 0.0)

    # ---- affine2 + ReLU.  The only real MXU work: bf16 operands, f32
    #      accumulation. Bias/ReLU stay f32 (v5e has no bf16 VPU).
    h2 = jnp.dot(w2_ref[...], h1.astype(jnp.bfloat16),
                 preferred_element_type=jnp.float32)             # (256, TB)
    h2 = jnp.maximum(h2 + b2_ref[...], 0.0)

    # ---- affine3.  N=1 is a degenerate MXU shape -> VPU multiply + XLU
    #      sublane reduction; the (1, TB) result is lane-dense for the store.
    out = jnp.sum(h2 * w3_ref[...], axis=0, keepdims=True) + b3_ref[0]
    o_ref[...] = out.astype(o_ref.dtype)


def state_value_forward(x, params, *, max_block_b=1024):
    """x: (B, 4) -> (B, 1) float32. params in PyTorch layouts."""
    w1, b1, w2, b2, w3, b3 = params
    B = x.shape[0]

    # Batch tile: multiple of 128 (lane width), capped so per-step f32
    # intermediates (h1: TB*512 B, h2: TB*1024 B) stay small even on v7x.
    tb = min(max_block_b, _round_up(max(B, 1), 128))
    bp = _round_up(B, tb)

    # Wrapper-side layout plumbing only: batch on the 128-lane axis everywhere.
    x_f32 = x.astype(jnp.float32)
    x_t = jnp.pad(x_f32, ((0, bp - B), (0, 0))).T        # (4, Bp)
    w1c = w1.astype(jnp.float32)                         # (128, 4)
    b1c = b1.reshape(128, 1).astype(jnp.float32)
    w2b = w2.astype(jnp.bfloat16)                        # (256, 128) MXU operand
    b2c = b2.reshape(256, 1).astype(jnp.float32)
    w3c = w3.reshape(256, 1).astype(jnp.float32)         # column for VPU mul+reduce
    b3s = b3.reshape(1).astype(jnp.float32)              # scalar -> SMEM

    const = lambda i: (0, 0)   # same block every step -> weights stay VMEM-resident

    out = pl.pallas_call(
        state_value_kernel,
        out_shape=jax.ShapeDtypeStruct((1, bp), jnp.float32),
        grid=(bp // tb,),
        in_specs=[
            pl.BlockSpec((4, tb), lambda i: (0, i)),              # x^T (batch-tiled)
            pl.BlockSpec((128, 4), const),                        # w1
            pl.BlockSpec((128, 1), const),                        # b1
            pl.BlockSpec((256, 128), const),                      # w2 (bf16)
            pl.BlockSpec((256, 1), const),                        # b2
            pl.BlockSpec((256, 1), const),                        # w3
            pl.BlockSpec(memory_space=pltpu.MemorySpace.SMEM),    # b3 scalar
        ],
        out_specs=pl.BlockSpec((1, tb), lambda i: (0, i)),        # lane-dense out
        compiler_params=pltpu.CompilerParams(
            dimension_semantics=("parallel",)),
    )(x_t, w1c, b1c, w2b, b2c, w3c, b3s)

    return out[0, :B].reshape(B, 1)


def init_params(key):
    """PyTorch nn.Linear default init, PyTorch layouts: W (out,in), b (out,)."""
    def linear_init(k, fan_in, fan_out):
        kw, kb = jax.random.split(k)
        bound = 1.0 / (fan_in ** 0.5)
        w = jax.random.uniform(kw, (fan_out, fan_in), jnp.float32,
                               minval=-bound, maxval=bound)
        b = jax.random.uniform(kb, (fan_out,), jnp.float32,
                               minval=-bound, maxval=bound)
        return w, b

    k1, k2, k3 = jax.random.split(key, 3)
    w1, b1 = linear_init(k1, 4, 128)
    w2, b2 = linear_init(k2, 128, 256)
    w3, b3 = linear_init(k3, 256, 1)
    return (w1, b1, w2, b2, w3, b3)


def reference_forward(x, params):
    """Pure-JAX f32 reference matching the PyTorch module."""
    w1, b1, w2, b2, w3, b3 = params
    h1 = jnp.maximum(x @ w1.T + b1, 0.0)
    h2 = jnp.maximum(h1 @ w2.T + b2, 0.0)
    return h2 @ w3.T + b3


if __name__ == "__main__":
    key = jax.random.PRNGKey(0)
    k_params, k_x = jax.random.split(key)

    params = init_params(k_params)
    # Small batch of CartPole-like 4-dim states.
    x = jax.random.normal(k_x, (8, 4), jnp.float32)

    out = jax.block_until_ready(state_value_forward(x, params))
    ref = reference_forward(x, params)

    assert out.shape == (8, 1), out.shape
    # bf16 MXU operands for layer 2 -> slightly looser tolerance than pure f32.
    assert jnp.allclose(out, ref, atol=2e-2, rtol=2e-2), "mismatch vs reference"

    print("KERNEL_OK")
</pallas_src>

<mosaic_0001>
module attributes {stable_mosaic.version = 11 : i64} {
  func.func @state_value_kernel(%arg0: i32, %arg1: memref<4x128xf32, #tpu.memory_space<vmem>>, %arg2: memref<128x4xf32, #tpu.memory_space<vmem>>, %arg3: memref<128x1xf32, #tpu.memory_space<vmem>>, %arg4: memref<256x128xbf16, #tpu.memory_space<vmem>>, %arg5: memref<256x1xf32, #tpu.memory_space<vmem>>, %arg6: memref<256x1xf32, #tpu.memory_space<vmem>>, %arg7: memref<1xf32, #tpu.memory_space<smem>>, %arg8: memref<1x128xf32, #tpu.memory_space<vmem>>) attributes {dimension_semantics = [#tpu.dimension_semantics<parallel>], iteration_bounds = array<i64: 1>, scalar_prefetch = 0 : i64, scratch_operands = 0 : i64, tpu.core_type = #tpu.core_type<tc>, window_params = [{transform_indices = @transform_0, window_bounds = array<i64: 4, 128>}, {pipeline_mode = #tpu.pipeline_mode<synchronous>, transform_indices = @transform_1, window_bounds = array<i64: 128, 4>}, {pipeline_mode = #tpu.pipeline_mode<synchronous>, transform_indices = @transform_2, window_bounds = array<i64: 128, 1>}, {pipeline_mode = #tpu.pipeline_mode<synchronous>, transform_indices = @transform_3, window_bounds = array<i64: 256, 128>}, {pipeline_mode = #tpu.pipeline_mode<synchronous>, transform_indices = @transform_4, window_bounds = array<i64: 256, 1>}, {pipeline_mode = #tpu.pipeline_mode<synchronous>, transform_indices = @transform_5, window_bounds = array<i64: 256, 1>}, {transform_indices = @transform_6, window_bounds = array<i64: 1>}, {transform_indices = @transform_7, window_bounds = array<i64: 1, 128>}]} {
    %c0 = arith.constant 0 : index
    %c0_0 = arith.constant 0 : index
    %0 = vector.load %arg1[%c0, %c0_0] : memref<4x128xf32, #tpu.memory_space<vmem>>, vector<4x128xf32>
    %c0_1 = arith.constant 0 : index
    %c0_2 = arith.constant 0 : index
    %1 = vector.load %arg2[%c0_1, %c0_2] : memref<128x4xf32, #tpu.memory_space<vmem>>, vector<128x4xf32>
    %c0_3 = arith.constant 0 : index
    %c0_4 = arith.constant 0 : index
    %2 = vector.load %arg3[%c0_3, %c0_4] : memref<128x1xf32, #tpu.memory_space<vmem>>, vector<128x1xf32>
    %3 = vector.shape_cast %2 : vector<128x1xf32> to vector<128x1xf32>
    %4 = vector.broadcast %3 : vector<128x1xf32> to vector<128x128xf32>
    %5 = vector.extract_strided_slice %1 {offsets = [0, 0], sizes = [128, 1], strides = [1, 1]} : vector<128x4xf32> to vector<128x1xf32>
    %6 = vector.extract_strided_slice %0 {offsets = [0, 0], sizes = [1, 128], strides = [1, 1]} : vector<4x128xf32> to vector<1x128xf32>
    %7 = vector.broadcast %5 : vector<128x1xf32> to vector<128x128xf32>
    %8 = vector.broadcast %6 : vector<1x128xf32> to vector<128x128xf32>
    %9 = arith.mulf %7, %8 : vector<128x128xf32>
    %10 = arith.addf %4, %9 : vector<128x128xf32>
    %11 = vector.extract_strided_slice %1 {offsets = [0, 1], sizes = [128, 1], strides = [1, 1]} : vector<128x4xf32> to vector<128x1xf32>
    %12 = vector.extract_strided_slice %0 {offsets = [1, 0], sizes = [1, 128], strides = [1, 1]} : vector<4x128xf32> to vector<1x128xf32>
    %13 = vector.broadcast %11 : vector<128x1xf32> to vector<128x128xf32>
    %14 = vector.broadcast %12 : vector<1x128xf32> to vector<128x128xf32>
    %15 = arith.mulf %13, %14 : vector<128x128xf32>
    %16 = arith.addf %10, %15 : vector<128x128xf32>
    %17 = vector.extract_strided_slice %1 {offsets = [0, 2], sizes = [128, 1], strides = [1, 1]} : vector<128x4xf32> to vector<128x1xf32>
    %18 = vector.extract_strided_slice %0 {offsets = [2, 0], sizes = [1, 128], strides = [1, 1]} : vector<4x128xf32> to vector<1x128xf32>
    %19 = vector.broadcast %17 : vector<128x1xf32> to vector<128x128xf32>
    %20 = vector.broadcast %18 : vector<1x128xf32> to vector<128x128xf32>
    %21 = arith.mulf %19, %20 : vector<128x128xf32>
    %22 = arith.addf %16, %21 : vector<128x128xf32>
    %23 = vector.extract_strided_slice %1 {offsets = [0, 3], sizes = [128, 1], strides = [1, 1]} : vector<128x4xf32> to vector<128x1xf32>
    %24 = vector.extract_strided_slice %0 {offsets = [3, 0], sizes = [1, 128], strides = [1, 1]} : vector<4x128xf32> to vector<1x128xf32>
    %25 = vector.broadcast %23 : vector<128x1xf32> to vector<128x128xf32>
    %26 = vector.broadcast %24 : vector<1x128xf32> to vector<128x128xf32>
    %27 = arith.mulf %25, %26 : vector<128x128xf32>
    %28 = arith.addf %22, %27 : vector<128x128xf32>
    %cst = arith.constant 0.000000e+00 : f32
    %29 = vector.broadcast %cst : f32 to vector<128x128xf32>
    %30 = arith.maximumf %28, %29 : vector<128x128xf32>
    %c0_5 = arith.constant 0 : index
    %c0_6 = arith.constant 0 : index
    %31 = vector.load %arg4[%c0_5, %c0_6] : memref<256x128xbf16, #tpu.memory_space<vmem>>, vector<256x128xbf16>
    %32 = arith.truncf %30 : vector<128x128xf32> to vector<128x128xbf16>
    %cst_7 = arith.constant dense<0.000000e+00> : vector<256x128xf32>
    %33 = tpu.matmul %31, %32, %cst_7 {dimension_numbers = #tpu.dot_dimension_numbers<[1], [0], [0], [1], [0, 0, 1, 1], [], []>} : vector<256x128xbf16>, vector<128x128xbf16>, vector<256x128xf32> -> vector<256x128xf32>
    %c0_8 = arith.constant 0 : index
    %c0_9 = arith.constant 0 : index
    %34 = vector.load %arg5[%c0_8, %c0_9] : memref<256x1xf32, #tpu.memory_space<vmem>>, vector<256x1xf32>
    %35 = vector.broadcast %34 : vector<256x1xf32> to vector<256x128xf32>
    %36 = arith.addf %33, %35 : vector<256x128xf32>
    %cst_10 = arith.constant 0.000000e+00 : f32
    %37 = vector.broadcast %cst_10 : f32 to vector<256x128xf32>
    %38 = arith.maximumf %36, %37 : vector<256x128xf32>
    %c0_11 = arith.constant 0 : index
    %c0_12 = arith.constant 0 : index
    %39 = vector.load %arg6[%c0_11, %c0_12] : memref<256x1xf32, #tpu.memory_space<vmem>>, vector<256x1xf32>
    %40 = vector.broadcast %39 : vector<256x1xf32> to vector<256x128xf32>
    %41 = arith.mulf %38, %40 : vector<256x128xf32>
    %cst_13 = arith.constant dense<0.000000e+00> : vector<128xf32>
    %42 = vector.multi_reduction <add>, %41, %cst_13 [0] : vector<256x128xf32> to vector<128xf32>
    %43 = vector.shape_cast %42 : vector<128xf32> to vector<1x128xf32>
    %c0_14 = arith.constant 0 : index
    %44 = memref.load %arg7[%c0_14] : memref<1xf32, #tpu.memory_space<smem>>
    %45 = vector.broadcast %44 : f32 to vector<1x128xf32>
    %46 = arith.addf %43, %45 : vector<1x128xf32>
    %c0_15 = arith.constant 0 : index
    %c0_16 = arith.constant 0 : index
    %47 = vector.load %arg8[%c0_15, %c0_16] : memref<1x128xf32, #tpu.memory_space<vmem>>, vector<1x128xf32>
    tpu.vector_store %arg8[%c0_15, %c0_16], %46 {strides = array<i32>} : memref<1x128xf32, #tpu.memory_space<vmem>>, vector<1x128xf32>,
    return
  }
  func.func @transform_0(%arg0: i32) -> (i32, i32) {
    %c0_i32 = arith.constant 0 : i32
    %c0_i32_0 = arith.constant 0 : i32
    return %c0_i32, %arg0 : i32, i32
  }
  func.func @transform_1(%arg0: i32) -> (i32, i32) {
    %c0_i32 = arith.constant 0 : i32
    %c0_i32_0 = arith.constant 0 : i32
    %c0_i32_1 = arith.constant 0 : i32
    return %c0_i32, %c0_i32_0 : i32, i32
  }
  func.func @transform_2(%arg0: i32) -> (i32, i32) {
    %c0_i32 = arith.constant 0 : i32
    %c0_i32_0 = arith.constant 0 : i32
    %c0_i32_1 = arith.constant 0 : i32
    return %c0_i32, %c0_i32_0 : i32, i32
  }
  func.func @transform_3(%arg0: i32) -> (i32, i32) {
    %c0_i32 = arith.constant 0 : i32
    %c0_i32_0 = arith.constant 0 : i32
    %c0_i32_1 = arith.constant 0 : i32
    return %c0_i32, %c0_i32_0 : i32, i32
  }
  func.func @transform_4(%arg0: i32) -> (i32, i32) {
    %c0_i32 = arith.constant 0 : i32
    %c0_i32_0 = arith.constant 0 : i32
    %c0_i32_1 = arith.constant 0 : i32
    return %c0_i32, %c0_i32_0 : i32, i32
  }
  func.func @transform_5(%arg0: i32) -> (i32, i32) {
    %c0_i32 = arith.constant 0 : i32
    %c0_i32_0 = arith.constant 0 : i32
    %c0_i32_1 = arith.constant 0 : i32
    return %c0_i32, %c0_i32_0 : i32, i32
  }
  func.func @transform_6(%arg0: i32) -> i32 {
    %c0_i32 = arith.constant 0 : i32
    %c0_i32_0 = arith.constant 0 : i32
    return %c0_i32 : i32
  }
  func.func @transform_7(%arg0: i32) -> (i32, i32) {
    %c0_i32 = arith.constant 0 : i32
    %c0_i32_0 = arith.constant 0 : i32
    return %c0_i32, %arg0 : i32, i32
  }
}

</mosaic_0001>

<bundles_post_ra>
// kernel: tpu_custom_call.1
= control target key start
LH: loop header
LB: loop body
LE: loop exit
PB: predicated region body
PF: predicated region fallthrough
CT: control target
= control target key end

     0   :  { %v1441_v3 = vmov 0   ;;  %s2296_s0 = inlined_call_operand.vmem [shape: f32[4,128], index: 0, kind: input, shape index: {}]   ;;  %s2297_s1 = inlined_call_operand.vmem [shape: f32[128,4], index: 1, kind: input, shape index: {}]   ;;  %s2298_s2 = inlined_call_operand.vmem [shape: f32[128,1], index: 2, kind: input, shape index: {}]   ;;  %s2299_s3 = inlined_call_operand.vmem [shape: bf16[256,128], index: 3, kind: input, shape index: {}]   ;;  %s2300_s4 = inlined_call_operand.vmem [shape: f32[256,1], index: 4, kind: input, shape index: {}]   ;;  %s2301_s5 = inlined_call_operand.vmem [shape: f32[256,1], index: 5, kind: input, shape index: {}]   ;;  %s2302_s6 = inlined_call_operand.<no memory space> [shape: f32[1], index: 6, kind: input, shape index: {}]   ;;  %s2303_s7 = inlined_call_operand.hbm [shape: f32[1,128], index: 7, kind: output, shape index: {}]  }
   0x1   :  { %v49_v0 = vld [vmem:[%s2298_s2 + $0x20] sm:$0xff]  ;;  %v47_v1 = vld [vmem:[%s2298_s2 + $0x10] sm:$0xff]  ;;  %1402 = vset.pattern.permute.xlu2 %v1441_v3  ;;  %1401 = vset.pattern.permute.xlu1 %v1441_v3 }
   0x2   :  { %v45_v2 = vld [vmem:[%s2298_s2] sm:$0xff]  ;;  %1400 = vset.pattern.permute.xlu0 %v1441_v3  ;;  %83 = vperm.xlu2 %1402, %v49_v0  }
   0x3   :  { %73 = vperm.xlu1 %1401, %v47_v1   ;;  %63 = vperm.xlu0 %1400, %v45_v2  }
   0x4   :  { %13 = vsyncpa [#allocation4], 0  ;;  %v50_v4 = vld [vmem:[%s2298_s2 + $0x28] sm:$0xff]  ;;  %v48_v5 = vld [vmem:[%s2298_s2 + $0x18] sm:$0xff]  ;;  %v1442_v33 = vmov 1   ;;  %v1443_v45 = vmov 2  }
   0x5   :  { %v46_v6 = vld [vmem:[%s2298_s2 + $0x8] sm:$0xff]  ;;  %v53_v7 = vld [vmem:[%s2298_s2 + $0x40] sm:$0xff]  ;;  %v52_v8 = vld [vmem:[%s2298_s2 + $0x38] sm:$0xff]  ;;  %s1282_s21 = sshll.u32 %s2303_s7, 4  ;;  %s1283_s21 = int_to_ptr.hbm [resolvable:$true] %s1282_s21 }
   0x6   :  { %v51_v9 = vld [vmem:[%s2298_s2 + $0x30] sm:$0xff]  ;;  %v56_v10 = vld [vmem:[%s2298_s2 + $0x58] sm:$0xff]  ;;  %v54_v12 = vld [vmem:[%s2298_s2 + $0x48] sm:$0xff] }
   0x7   :  { %v55_v11 = vld [vmem:[%s2298_s2 + $0x50] sm:$0xff]  ;;  %v58_v14 = vld [vmem:[%s2298_s2 + $0x68] sm:$0xff]  ;;  %v57_v15 = vld [vmem:[%s2298_s2 + $0x60] sm:$0xff] }
   0x8   :  { %v59_v13 = vld [vmem:[%s2298_s2 + $0x70] sm:$0xff]  ;;  %v1537_v16 = vld [vmem:[%s2297_s1 + $0x8] sm:$0xff]  ;;  %v60_v17 = vld [vmem:[%s2298_s2 + $0x78] sm:$0xff] }
   0x9   :  { %v1545_v18 = vld [vmem:[%s2297_s1] sm:$0xff]  ;;  %v1557_v20 = vld [vmem:[%s2297_s1 + $0x10] sm:$0xff]  ;;  %v1562_v21 = vld [vmem:[%s2297_s1 + $0x18] sm:$0xff] }
   0xa   :  { %88 = vperm.xlu2 %1402, %v50_v4   ;;  %v1552_v19 = vld [vmem:[%s2297_s1 + $0x20] sm:$0xff]  ;;  %v1570_v22 = vld [vmem:[%s2297_s1 + $0x38] sm:$0xff]  ;;  %v1575_v23 = vld [vmem:[%s2297_s1 + $0x28] sm:$0xff] }
   0xb   :  { %78 = vperm.xlu1 %1401, %v48_v5   ;;  %68 = vperm.xlu0 %1400, %v46_v6   ;;  %v1580_v24 = vld [vmem:[%s2297_s1 + $0x30] sm:$0xff]  ;;  %v1593_v26 = vld [vmem:[%s2297_s1 + $0x40] sm:$0xff]  ;;  %v1598_v27 = vld [vmem:[%s2297_s1 + $0x48] sm:$0xff] }
   0xc   :  { %v1588_v25 = vld [vmem:[%s2297_s1 + $0x50] sm:$0xff]  ;;  %v1606_v28 = vld [vmem:[%s2297_s1 + $0x68] sm:$0xff]  ;;  %v1611_v29 = vld [vmem:[%s2297_s1 + $0x58] sm:$0xff] }
   0xd   :  { %v1616_v30 = vld [vmem:[%s2297_s1 + $0x60] sm:$0xff]  ;;  %v1624_v31 = vld [vmem:[%s2297_s1 + $0x70] sm:$0xff]  ;;  %v1629_v32 = vld [vmem:[%s2297_s1 + $0x78] sm:$0xff] }
   0xe   :  { %v1660_v43 = vld [vmem:[%s2296_s0] sm:$0xf]  ;;  %s1445_s0 = smov [#allocation3]  }
   0xf   :  { %v1663_v44 = vperm.slane %v1660_v43, 0  ;;  %s1280_s18 = sshll.u32 %s1445_s0, 4  ;;  %s1281_s18 = int_to_ptr.vmem [resolvable:$true] %s1280_s18 }
  0x12   :  { %103 = vperm.xlu2 %1402, %v53_v7   ;;  %v1444_v7 = vmov 3  }
  0x13   :  { %98 = vperm.xlu1 %1401, %v52_v8   ;;  %93 = vperm.xlu0 %1400, %v51_v9  }
  0x1a   :  { %118 = vperm.xlu2 %1402, %v56_v10  }
  0x1b   :  { %113 = vperm.xlu1 %1401, %v55_v11   ;;  %108 = vperm.xlu0 %1400, %v54_v12  }
  0x22   :  { %133 = vperm.xlu2 %1402, %v59_v13  }
  0x23   :  { %128 = vperm.xlu1 %1401, %v58_v14   ;;  %123 = vperm.xlu0 %1400, %v57_v15   ;;  %v1703_v15 = vperm.slane %v1660_v43, 1 }
  0x2a   :  { %148 = vperm.xlu2 %1402, %v1537_v16  }
  0x2b   :  { %138 = vperm.xlu0 %1400, %v60_v17   ;;  %143 = vperm.xlu1 %1401, %v1545_v18  }
  0x32   :  { %163 = vperm.xlu2 %1402, %v1552_v19  }
  0x33   :  { %153 = vperm.xlu0 %1400, %v1557_v20   ;;  %158 = vperm.xlu1 %1401, %v1562_v21  }
  0x3a   :  { %178 = vperm.xlu2 %1402, %v1570_v22  }
  0x3b   :  { %168 = vperm.xlu0 %1400, %v1575_v23   ;;  %173 = vperm.xlu1 %1401, %v1580_v24  }
  0x42   :  { %193 = vperm.xlu2 %1402, %v1588_v25  }
  0x43   :  { %183 = vperm.xlu0 %1400, %v1593_v26   ;;  %188 = vperm.xlu1 %1401, %v1598_v27  }
  0x4a   :  { %208 = vperm.xlu2 %1402, %v1606_v28  }
  0x4b   :  { %198 = vperm.xlu0 %1400, %v1611_v29   ;;  %203 = vperm.xlu1 %1401, %v1616_v30  }
  0x52   :  { %1403 = vset.pattern.permute.xlu2 %v1442_v33 }
  0x53   :  { %213 = vperm.xlu0 %1400, %v1624_v31   ;;  %218 = vperm.xlu1 %1401, %v1629_v32  }
  0x54   :  { %255 = vperm.xlu2 %1403, %v1545_v18  }
  0x5b   :  { %1404 = vset.pattern.permute.xlu0 %v1442_v33  ;;  %1405 = vset.pattern.permute.xlu1 %v1442_v33 }
  0x5c   :  { %259 = vperm.xlu0 %1404, %v1537_v16   ;;  %267 = vperm.xlu2 %1403, %v1562_v21   ;;  %v84_v34 = vpop.permute.xlu2 %83 }
  0x5d   :  { %263 = vperm.xlu1 %1405, %v1557_v20  }
  0x64   :  { %279 = vperm.xlu0 %1404, %v1580_v24   ;;  %275 = vperm.xlu2 %1403, %v1575_v23   ;;  %v1639_v35 = vpop.permute.xlu2 %88 }
  0x65   :  { %271 = vperm.xlu1 %1405, %v1552_v19  }
  0x6c   :  { %291 = vperm.xlu0 %1404, %v1598_v27   ;;  %287 = vperm.xlu2 %1403, %v1593_v26   ;;  %v1644_v36 = vpop.permute.xlu2 %103 }
  0x6d   :  { %283 = vperm.xlu1 %1405, %v1570_v22  }
  0x74   :  { %303 = vperm.xlu0 %1404, %v1616_v30   ;;  %299 = vperm.xlu2 %1403, %v1611_v29   ;;  %v1649_v37 = vpop.permute.xlu2 %118 }
  0x75   :  { %295 = vperm.xlu1 %1405, %v1588_v25   ;;  %v74_v38 = vpop.permute.xlu1 %73  ;;  %v64_v39 = vpop.permute.xlu0 %63 }
  0x7c   :  { %315 = vperm.xlu0 %1404, %v1629_v32   ;;  %311 = vperm.xlu2 %1403, %v1624_v31   ;;  %v1654_v40 = vpop.permute.xlu2 %133 }
  0x7d   :  { %307 = vperm.xlu1 %1405, %v1606_v28   ;;  %v79_v41 = vpop.permute.xlu1 %78  ;;  %v69_v42 = vpop.permute.xlu0 %68 }
  0x84   :  { %1408 = vset.pattern.permute.xlu0 %v1443_v45  ;;  %1407 = vset.pattern.permute.xlu2 %v1443_v45  ;;  %v149_v46 = vpop.permute.xlu2 %148 }
  0x85   :  { %1406 = vset.pattern.permute.xlu1 %v1443_v45  ;;  %v99_v47 = vpop.permute.xlu1 %98  ;;  %v94_v48 = vpop.permute.xlu0 %93  ;;  %360 = vperm.xlu0 %1408, %v1557_v20   ;;  %v223_v49 = vmul.f32 %v1663_v44, %v149_v46 }
  0x86   :  { %356 = vperm.xlu2 %1407, %v1537_v16   ;;  %352 = vperm.xlu1 %1406, %v1545_v18  }
  0x87   :  { %v1669_v50 = vadd.f32 %v223_v49, %v69_v42 }
  0x8c   :  { %v164_v51 = vpop.permute.xlu2 %163 }
  0x8d   :  { %v114_v52 = vpop.permute.xlu1 %113  ;;  %v109_v53 = vpop.permute.xlu0 %108  ;;  %380 = vperm.xlu0 %1408, %v1570_v22   ;;  %v226_v54 = vmul.f32 %v1663_v44, %v164_v51 }
  0x8e   :  { %368 = vperm.xlu2 %1407, %v1552_v19   ;;  %364 = vperm.xlu1 %1406, %v1562_v21  }
  0x8f   :  { %v1675_v55 = vadd.f32 %v226_v54, %v84_v34 }
  0x94   :  { %v179_v56 = vpop.permute.xlu2 %178 }
  0x95   :  { %v129_v57 = vpop.permute.xlu1 %128  ;;  %v124_v58 = vpop.permute.xlu0 %123  ;;  %392 = vperm.xlu0 %1408, %v1588_v25   ;;  %v229_v59 = vmul.f32 %v1663_v44, %v179_v56 }
  0x96   :  { %376 = vperm.xlu2 %1407, %v1580_v24   ;;  %372 = vperm.xlu1 %1406, %v1575_v23  }
  0x97   :  { %v1681_v60 = vadd.f32 %v229_v59, %v99_v47 }
  0x9c   :  { %v194_v61 = vpop.permute.xlu2 %193 }
  0x9d   :  { %v1683_v62 = vpop.permute.xlu0 %138  ;;  %404 = vperm.xlu0 %1408, %v1606_v28   ;;  %v232_v63 = vmul.f32 %v1663_v44, %v194_v61  ;;  %v144_v0 = vpop.permute.xlu1 %143 }
  0x9e   :  { %388 = vperm.xlu2 %1407, %v1598_v27   ;;  %384 = vperm.xlu1 %1406, %v1593_v26   ;;  %v222_v1 = vmul.f32 %v1663_v44, %v144_v0 }
  0x9f   :  { %v1690_v2 = vadd.f32 %v232_v63, %v114_v52 }
  0xa0   :  { %v238_v4 = vadd.f32 %v222_v1, %v64_v39 }
  0xa4   :  { %v209_v5 = vpop.permute.xlu2 %208 }
  0xa5   :  { %v154_v6 = vpop.permute.xlu0 %153  ;;  %1409 = vset.pattern.permute.xlu0 %v1444_v7  ;;  %v235_v8 = vmul.f32 %v1663_v44, %v209_v5  ;;  %v159_v9 = vpop.permute.xlu1 %158 }
  0xa6   :  { %v224_v10 = vmul.f32 %v1663_v44, %v154_v6  ;;  %400 = vperm.xlu2 %1407, %v1616_v30   ;;  %396 = vperm.xlu1 %1406, %v1611_v29   ;;  %v225_v11 = vmul.f32 %v1663_v44, %v159_v9 }
  0xa7   :  { %v1697_v12 = vadd.f32 %v235_v8, %v129_v57  ;;  %449 = vperm.xlu0 %1409, %v1545_v18  }
  0xa8   :  { %v1700_v13 = vadd.f32 %v224_v10, %v74_v38  ;;  %v241_v14 = vadd.f32 %v225_v11, %v79_v41 }
  0xad   :  { %v169_v17 = vpop.permute.xlu0 %168  ;;  %v174_v33 = vpop.permute.xlu1 %173 }
  0xae   :  { %412 = vperm.xlu2 %1407, %v1629_v32   ;;  %408 = vperm.xlu1 %1406, %v1624_v31   ;;  %v228_v34 = vmul.f32 %v1663_v44, %v174_v33  ;;  %v256_v39 = vpop.permute.xlu2 %255  ;;  %v227_v51 = vmul.f32 %v1663_v44, %v169_v17 }
  0xaf   :  { %469 = vperm.xlu0 %1409, %v1575_v23   ;;  %v319_v42 = vmul.f32 %v1703_v15, %v256_v39 }
  0xb0   :  { %v1710_v18 = vadd.f32 %v228_v34, %v94_v48  ;;  %v243_v59 = vadd.f32 %v227_v51, %v1639_v35  ;;  %v613_v51 = vld [vmem:[%s2300_s4 + $0x60] sm:$0xff] }
  0xb1   :  { %v1712_v38 = vadd.f32 %v319_v42, %v238_v4  ;;  %v602_v4 = vld [vmem:[%s2300_s4 + $0x8] sm:$0xff] }
  0xb5   :  { %v184_v41 = vpop.permute.xlu0 %183  ;;  %v189_v45 = vpop.permute.xlu1 %188 }
  0xb6   :  { %1411 = vset.pattern.permute.xlu2 %v1444_v7  ;;  %1410 = vset.pattern.permute.xlu1 %v1444_v7  ;;  %v231_v46 = vmul.f32 %v1663_v44, %v189_v45  ;;  %v268_v47 = vpop.permute.xlu2 %267 }
  0xb7   :  { %481 = vperm.xlu0 %1409, %v1593_v26   ;;  %457 = vperm.xlu2 %1411, %v1557_v20   ;;  %v322_v49 = vmul.f32 %v1703_v15, %v268_v47 }
  0xb8   :  { %v1718_v23 = vadd.f32 %v231_v46, %v109_v53  ;;  %453 = vperm.xlu1 %1410, %v1537_v16   ;;  %v230_v53 = vmul.f32 %v1663_v44, %v184_v41 }
  0xb9   :  { %v1721_v48 = vadd.f32 %v322_v49, %v241_v14 }
  0xba   :  { %v246_v35 = vadd.f32 %v230_v53, %v1644_v36 }
  0xbd   :  { %v199_v52 = vpop.permute.xlu0 %198  ;;  %v204_v54 = vpop.permute.xlu1 %203 }
  0xbe   :  { %v234_v56 = vmul.f32 %v1663_v44, %v204_v54  ;;  %v276_v57 = vpop.permute.xlu2 %275 }
  0xbf   :  { %493 = vperm.xlu0 %1409, %v1611_v29   ;;  %465 = vperm.xlu2 %1411, %v1552_v19   ;;  %v324_v20 = vmul.f32 %v1703_v15, %v276_v57 }
  0xc0   :  { %v1729_v26 = vadd.f32 %v234_v56, %v124_v58  ;;  %461 = vperm.xlu1 %1410, %v1562_v21   ;;  %v233_v58 = vmul.f32 %v1663_v44, %v199_v52 }
  0xc1   :  { %v1732_v16 = vadd.f32 %v324_v20, %v243_v59 }
  0xc5   :  { %v214_v61 = vpop.permute.xlu0 %213  ;;  %v219_v63 = vpop.permute.xlu1 %218 }
  0xc6   :  { %v237_v0 = vmul.f32 %v1663_v44, %v219_v63  ;;  %v288_v1 = vpop.permute.xlu2 %287  ;;  %v236_v9 = vmul.f32 %v1663_v44, %v214_v61 }
  0xc7   :  { %505 = vperm.xlu0 %1409, %v1624_v31   ;;  %477 = vperm.xlu2 %1411, %v1570_v22   ;;  %v327_v19 = vmul.f32 %v1703_v15, %v288_v1  ;;  %v249_v31 = vadd.f32 %v233_v58, %v1649_v37 }
  0xc8   :  { %v1741_v29 = vadd.f32 %v237_v0, %v1683_v62  ;;  %473 = vperm.xlu1 %1410, %v1580_v24   ;;  %v606_v0 = vld [vmem:[%s2300_s4 + $0x28] sm:$0xff] }
  0xc9   :  { %v1744_v21 = vadd.f32 %v327_v19, %v246_v35 }
  0xce   :  { %v260_v36 = vpop.permute.xlu0 %259  ;;  %v300_v5 = vpop.permute.xlu2 %299 }
  0xcf   :  { %v320_v22 = vmul.f32 %v1703_v15, %v260_v36  ;;  %1413 = vset.pattern.permute.xlu0 %v1441_v3  ;;  %489 = vperm.xlu2 %1411, %v1588_v25   ;;  %v330_v24 = vmul.f32 %v1703_v15, %v300_v5  ;;  %v264_v62 = vpop.permute.xlu1 %263  ;;  %v607_v25 = vld [vmem:[%s2300_s4 + $0x30] sm:$0xff] }
  0xd0   :  { %485 = vperm.xlu1 %1410, %v1598_v27   ;;  %v321_v6 = vmul.f32 %v1703_v15, %v264_v62  ;;  %640 = vperm.xlu0 %1413, %v602_v4   ;;  %v252_v27 = vadd.f32 %v236_v9, %v1654_v40  ;;  %v610_v40 = vld [vmem:[%s2300_s4 + $0x48] sm:$0xff] }
  0xd1   :  { %v336_v7 = vadd.f32 %v320_v22, %v1669_v50  ;;  %v1758_v8 = vadd.f32 %v330_v24, %v249_v31  ;;  %v619_v31 = vld [vmem:[%s2300_s4 + $0x90] sm:$0xff] }
  0xd2   :  { %v1761_v37 = vadd.f32 %v321_v6, %v1700_v13 }
  0xd6   :  { %v280_v10 = vpop.permute.xlu0 %279  ;;  %v312_v11 = vpop.permute.xlu2 %311 }
  0xd7   :  { %v325_v14 = vmul.f32 %v1703_v15, %v280_v10  ;;  %501 = vperm.xlu2 %1411, %v1606_v28   ;;  %v333_v50 = vmul.f32 %v1703_v15, %v312_v11  ;;  %v272_v17 = vpop.permute.xlu1 %271  ;;  %v1781_v28 = vperm.slane %v1660_v43, 2  ;;  %v612_v10 = vld [vmem:[%s2300_s4 + $0x58] sm:$0xff]  ;;  %v611_v11 = vld [vmem:[%s2300_s4 + $0x50] sm:$0xff] }
  0xd8   :  { %497 = vperm.xlu1 %1410, %v1616_v30   ;;  %v323_v13 = vmul.f32 %v1703_v15, %v272_v17  ;;  %665 = vperm.xlu0 %1413, %v607_v25   ;;  %v601_v30 = vld [vmem:[%s2300_s4] sm:$0xff]  ;;  %v622_v25 = vld [vmem:[%s2300_s4 + $0xa8] sm:$0xff] }
  0xd9   :  { %v341_v44 = vadd.f32 %v325_v14, %v1710_v18  ;;  %v1774_v33 = vadd.f32 %v333_v50, %v252_v27 }
  0xda   :  { %v339_v34 = vadd.f32 %v323_v13, %v1675_v55 }
  0xde   :  { %v292_v39 = vpop.permute.xlu0 %291 }
  0xdf   :  { %v328_v42 = vmul.f32 %v1703_v15, %v292_v39  ;;  %1412 = vset.pattern.permute.xlu2 %v1441_v3  ;;  %v284_v18 = vpop.permute.xlu1 %283 }
  0xe0   :  { %509 = vperm.xlu1 %1410, %v1629_v32   ;;  %v326_v55 = vmul.f32 %v1703_v15, %v284_v18  ;;  %680 = vperm.xlu0 %1413, %v610_v40   ;;  %v357_v41 = vpop.permute.xlu2 %356  ;;  %v604_v32 = vld [vmem:[%s2300_s4 + $0x18] sm:$0xff]  ;;  %v614_v40 = vld [vmem:[%s2300_s4 + $0x68] sm:$0xff] }
  0xe1   :  { %v1791_v45 = vadd.f32 %v328_v42, %v1718_v23  ;;  %635 = vperm.xlu2 %1412, %v601_v30   ;;  %v417_v46 = vmul.f32 %v1781_v28, %v357_v41  ;;  %v603_v23 = vld [vmem:[%s2300_s4 + $0x10] sm:$0xff]  ;;  %v618_v41 = vld [vmem:[%s2300_s4 + $0x88] sm:$0xff] }
  0xe2   :  { %v342_v47 = vadd.f32 %v326_v55, %v1681_v60  ;;  %v628_v55 = vld [vmem:[%s2300_s4 + $0xd8] sm:$0xff] }
  0xe3   :  { %v1795_v49 = vadd.f32 %v417_v46, %v336_v7  ;;  %v617_v46 = vld [vmem:[%s2300_s4 + $0x80] sm:$0xff] }
  0xe6   :  { %v304_v52 = vpop.permute.xlu0 %303 }
  0xe7   :  { %v331_v54 = vmul.f32 %v1703_v15, %v304_v52  ;;  %v296_v56 = vpop.permute.xlu1 %295 }
  0xe8   :  { %1414 = vset.pattern.permute.xlu1 %v1441_v3  ;;  %v329_v60 = vmul.f32 %v1703_v15, %v296_v56  ;;  %695 = vperm.xlu0 %1413, %v613_v51   ;;  %v369_v57 = vpop.permute.xlu2 %368  ;;  %v616_v3 = vld [vmem:[%s2300_s4 + $0x78] sm:$0xff] }
  0xe9   :  { %v1810_v59 = vadd.f32 %v331_v54, %v1729_v26  ;;  %650 = vperm.xlu2 %1412, %v604_v32   ;;  %v420_v20 = vmul.f32 %v1781_v28, %v369_v57  ;;  %645 = vperm.xlu1 %1414, %v603_v23   ;;  %v605_v26 = vld [vmem:[%s2300_s4 + $0x20] sm:$0xff]  ;;  %v631_v23 = vld [vmem:[%s2300_s4 + $0xf0] sm:$0xff]  ;;  %v620_v56 = vld [vmem:[%s2300_s4 + $0x98] sm:$0xff] }
  0xea   :  { %v1814_v53 = vadd.f32 %v329_v60, %v1690_v2  ;;  %v621_v54 = vld [vmem:[%s2300_s4 + $0xa0] sm:$0xff] }
  0xeb   :  { %v1816_v61 = vadd.f32 %v420_v20, %v339_v34  ;;  %v615_v34 = vld [vmem:[%s2300_s4 + $0x70] sm:$0xff] }
  0xee   :  { %v316_v63 = vpop.permute.xlu0 %315 }
  0xef   :  { %v334_v1 = vmul.f32 %v1703_v15, %v316_v63  ;;  %v308_v35 = vpop.permute.xlu1 %307 }
  0xf0   :  { %v332_v2 = vmul.f32 %v1703_v15, %v308_v35  ;;  %710 = vperm.xlu0 %1413, %v616_v3   ;;  %v377_v19 = vpop.permute.xlu2 %376  ;;  %v609_v15 = vld [vmem:[%s2300_s4 + $0x40] sm:$0xff]  ;;  %v1011_v3 = vld [vmem:[%s2301_s5 + $0x8] sm:$0xff] }
  0xf1   :  { %v1830_v58 = vadd.f32 %v334_v1, %v1741_v29  ;;  %660 = vperm.xlu2 %1412, %v606_v0   ;;  %v422_v4 = vmul.f32 %v1781_v28, %v377_v19  ;;  %655 = vperm.xlu1 %1414, %v605_v26   ;;  %v608_v29 = vld [vmem:[%s2300_s4 + $0x38] sm:$0xff]  ;;  %v623_v26 = vld [vmem:[%s2300_s4 + $0xb0] sm:$0xff] }
  0xf2   :  { %v1834_v36 = vadd.f32 %v332_v2, %v1697_v12  ;;  %v624_v0 = vld [vmem:[%s2300_s4 + $0xb8] sm:$0xff] }
  0xf3   :  { %v1836_v5 = vadd.f32 %v422_v4, %v341_v44  ;;  %v625_v44 = vld [vmem:[%s2300_s4 + $0xc0] sm:$0xff] }
  0xf7   :  { %v361_v22 = vpop.permute.xlu0 %360 }
  0xf8   :  { %v418_v24 = vmul.f32 %v1781_v28, %v361_v22  ;;  %725 = vperm.xlu0 %1413, %v619_v31   ;;  %v1848_v12 = vpop.permute.xlu2 %388  ;;  %v353_v62 = vpop.permute.xlu1 %352  ;;  %v1014_v31 = vld [vmem:[%s2301_s5 + $0x20] sm:$0xff]  ;;  %v627_v22 = vld [vmem:[%s2300_s4 + $0xd0] sm:$0xff] }
  0xf9   :  { %675 = vperm.xlu2 %1412, %v609_v15   ;;  %670 = vperm.xlu1 %1414, %v608_v29   ;;  %v416_v6 = vmul.f32 %v1781_v28, %v353_v62 }
  0xfa   :  { %v1852_v7 = vadd.f32 %v418_v24, %v1761_v37  ;;  %v626_v24 = vld [vmem:[%s2300_s4 + $0xc8] sm:$0xff] }
  0xfb   :  { %v1855_v9 = vadd.f32 %v416_v6, %v1712_v38 }
  0xff   :  { %v381_v27 = vpop.permute.xlu0 %380 }
 0x100   :  { %v423_v14 = vmul.f32 %v1781_v28, %v381_v27  ;;  %740 = vperm.xlu0 %1413, %v622_v25   ;;  %v1867_v37 = vpop.permute.xlu2 %400  ;;  %v365_v38 = vpop.permute.xlu1 %364 }
 0x101   :  { %690 = vperm.xlu2 %1412, %v612_v10   ;;  %685 = vperm.xlu1 %1414, %v611_v11   ;;  %v419_v50 = vmul.f32 %v1781_v28, %v365_v38 }
 0x102   :  { %v1870_v17 = vadd.f32 %v423_v14, %v342_v47 }
 0x103   :  { %v1873_v13 = vadd.f32 %v419_v50, %v1721_v48  ;;  %v1017_v50 = vld [vmem:[%s2301_s5 + $0x38] sm:$0xff] }
 0x107   :  { %v393_v39 = vpop.permute.xlu0 %392 }
 0x108   :  { %755 = vperm.xlu0 %1413, %v625_v44   ;;  %v1884_v30 = vpop.permute.xlu2 %412  ;;  %v373_v42 = vpop.permute.xlu1 %372  ;;  %v426_v14 = vmul.f32 %v1781_v28, %v393_v39 }
 0x109   :  { %705 = vperm.xlu2 %1412, %v615_v34   ;;  %700 = vperm.xlu1 %1414, %v614_v40   ;;  %v421_v48 = vmul.f32 %v1781_v28, %v373_v42  ;;  %v630_v40 = vld [vmem:[%s2300_s4 + $0xe8] sm:$0xff] }
 0x10b   :  { %v437_v18 = vadd.f32 %v421_v48, %v1732_v16  ;;  %v442_v48 = vadd.f32 %v426_v14, %v1814_v53  ;;  %v1020_v53 = vld [vmem:[%s2301_s5 + $0x50] sm:$0xff] }
 0x10c   :  { %v1016_v14 = vld [vmem:[%s2301_s5 + $0x30] sm:$0xff] }
 0x10f   :  { %v1897_v47 = vpop.permute.xlu0 %404 }
 0x110   :  { %770 = vperm.xlu0 %1413, %v628_v55   ;;  %v385_v51 = vpop.permute.xlu1 %384 }
 0x111   :  { %720 = vperm.xlu2 %1412, %v618_v41   ;;  %715 = vperm.xlu1 %1414, %v617_v46   ;;  %v424_v16 = vmul.f32 %v1781_v28, %v385_v51  ;;  %v458_v52 = vpop.permute.xlu2 %457 }
 0x113   :  { %v1901_v32 = vadd.f32 %v424_v16, %v1744_v21  ;;  %v1913_v21 = vperm.slane %v1660_v43, 3 }
 0x115   :  { %v515_v39 = vmul.f32 %v1913_v21, %v458_v52 }
 0x118   :  { %785 = vperm.xlu0 %1413, %v631_v23   ;;  %v397_v60 = vpop.permute.xlu1 %396  ;;  %v531_v23 = vadd.f32 %v515_v39, %v1852_v7 }
 0x119   :  { %735 = vperm.xlu2 %1412, %v621_v54   ;;  %730 = vperm.xlu1 %1414, %v620_v56   ;;  %v450_v57 = vpop.permute.xlu0 %449  ;;  %v466_v20 = vpop.permute.xlu2 %465  ;;  %v427_v44 = vmul.f32 %v1781_v28, %v397_v60 }
 0x11a   :  { %v517_v63 = vmul.f32 %v1913_v21, %v466_v20  ;;  %v513_v62 = vmul.f32 %v1913_v21, %v450_v57  ;;  %v632_v20 = vld [vmem:[%s2300_s4 + $0xf8] sm:$0xff]  ;;  %v547_v7 = vmax.f32 %v531_v23, 0.0 }
 0x11b   :  { %v443_v41 = vadd.f32 %v427_v44, %v1758_v8  ;;  %v1010_v8 = vld [vmem:[%s2301_s5] sm:$0xff] }
 0x11c   :  { %v533_v2 = vadd.f32 %v517_v63, %v1816_v61  ;;  %v529_v10 = vadd.f32 %v513_v62, %v1855_v9  ;;  %v629_v9 = vld [vmem:[%s2300_s4 + $0xe0] sm:$0xff] }
 0x11e   :  { %v549_v15 = vmax.f32 %v533_v2, 0.0  ;;  %v545_v42 = vmax.f32 %v529_v10, 0.0 }
 0x120   :  { %1049 = vperm.xlu0 %1413, %v1011_v3   ;;  %v1925_v1 = vpop.permute.xlu1 %408 }
 0x121   :  { %750 = vperm.xlu2 %1412, %v624_v0   ;;  %745 = vperm.xlu1 %1414, %v623_v26   ;;  %v470_v43 = vpop.permute.xlu0 %469  ;;  %v478_v35 = vpop.permute.xlu2 %477 }
 0x122   :  { %v518_v19 = vmul.f32 %v1913_v21, %v470_v43  ;;  %v520_v3 = vmul.f32 %v1913_v21, %v478_v35  ;;  %v1013_v35 = vld [vmem:[%s2301_s5 + $0x18] sm:$0xff] }
 0x124   :  { %v534_v4 = vadd.f32 %v518_v19, %v437_v18  ;;  %v536_v43 = vadd.f32 %v520_v3, %v1870_v17  ;;  %v1038_v3 = vld [vmem:[%s2301_s5 + $0xe0] sm:$0xff] }
 0x126   :  { %v550_v29 = vmax.f32 %v534_v4, 0.0  ;;  %v1023_v4 = vld [vmem:[%s2301_s5 + $0x68] sm:$0xff]  ;;  %v552_v17 = vmax.f32 %v536_v43, 0.0 }
 0x127   :  { %v1031_v43 = vld [vmem:[%s2301_s5 + $0xa8] sm:$0xff] }
 0x128   :  { %v1939_v61 = vpack.c.bf16 %v550_v29, %v549_v15  ;;  %1064 = vperm.xlu0 %1413, %v1014_v31   ;;  %v1012_v31 = vld [vmem:[%s2301_s5 + $0x10] sm:$0xff]  ;;  %v425_v15 = vmul.f32 %v1781_v28, %v1848_v12  ;;  %v429_v12 = vmul.f32 %v1781_v28, %v1897_v47 }
 0x129   :  { %765 = vperm.xlu2 %1412, %v627_v22   ;;  %760 = vperm.xlu1 %1414, %v626_v24   ;;  %v482_v6 = vpop.permute.xlu0 %481  ;;  %v490_v11 = vpop.permute.xlu2 %489 }
 0x12a   :  { %v454_v25 = vpop.permute.xlu1 %453  ;;  %v523_v34 = vmul.f32 %v1913_v21, %v490_v11  ;;  %v521_v29 = vmul.f32 %v1913_v21, %v482_v6  ;;  %v441_v62 = vadd.f32 %v425_v15, %v1791_v45  ;;  %v1026_v6 = vld [vmem:[%s2301_s5 + $0x80] sm:$0xff]  ;;  %v1015_v45 = vld [vmem:[%s2301_s5 + $0x28] sm:$0xff]  ;;  %v445_v44 = vadd.f32 %v429_v12, %v1834_v36  ;;  %v1037_v15 = vld [vmem:[%s2301_s5 + $0xd8] sm:$0xff] }
 0x12b   :  { %v514_v27 = vmul.f32 %v1913_v21, %v454_v25  ;;  %v1019_v36 = vld [vmem:[%s2301_s5 + $0x48] sm:$0xff]  ;;  %v1361_v12 = vld [vmem:[%s2299_s3 + $0x30] sm:$0xff] }
 0x12c   :  { %v539_v46 = vadd.f32 %v523_v34, %v442_v48  ;;  %v537_v25 = vadd.f32 %v521_v29, %v1901_v32  ;;  %v428_v32 = vmul.f32 %v1781_v28, %v1867_v37  ;;  %v430_v37 = vmul.f32 %v1781_v28, %v1925_v1  ;;  %v1356_v29 = vld [vmem:[%s2299_s3 + $0x8] sm:$0xff] }
 0x12d   :  { %v530_v38 = vadd.f32 %v514_v27, %v1795_v49 }
 0x12e   :  { %v555_v60 = vmax.f32 %v539_v46, 0.0 }
 0x12f   :  { %v546_v49 = vmax.f32 %v530_v38, 0.0  ;;  %v553_v38 = vmax.f32 %v537_v25, 0.0 }
 0x130   :  { %1079 = vperm.xlu0 %1413, %v1017_v50  }
 0x131   :  { %v1958_v18 = vpack.c.bf16 %v546_v49, %v545_v42  ;;  %780 = vperm.xlu2 %1412, %v630_v40   ;;  %775 = vperm.xlu1 %1414, %v629_v9   ;;  %v494_v55 = vpop.permute.xlu0 %493  ;;  %v502_v11 = vpop.permute.xlu2 %501  ;;  %v444_v9 = vadd.f32 %v428_v32, %v1810_v59  ;;  %v1018_v59 = vld [vmem:[%s2301_s5 + $0x40] sm:$0xff] }
 0x132   :  { %v524_v51 = vmul.f32 %v1913_v21, %v494_v55  ;;  %v462_v16 = vpop.permute.xlu1 %461  ;;  %v526_v50 = vmul.f32 %v1913_v21, %v502_v11  ;;  %v1029_v55 = vld [vmem:[%s2301_s5 + $0x98] sm:$0xff] }
 0x133   :  { %v516_v52 = vmul.f32 %v1913_v21, %v462_v16  ;;  %v446_v16 = vadd.f32 %v430_v37, %v1774_v33  ;;  %v1021_v33 = vld [vmem:[%s2301_s5 + $0x58] sm:$0xff] }
 0x134   :  { %v540_v54 = vadd.f32 %v524_v51, %v443_v41  ;;  %v542_v39 = vadd.f32 %v526_v50, %v445_v44  ;;  %v431_v41 = vmul.f32 %v1781_v28, %v1884_v30  ;;  %v1032_v28 = vld [vmem:[%s2301_s5 + $0xb0] sm:$0xff]  ;;  %v1022_v30 = vld [vmem:[%s2301_s5 + $0x60] sm:$0xff]  ;;  %v1362_v44 = vld [vmem:[%s2299_s3 + $0x38] sm:$0xff] }
 0x135   :  { %v532_v56 = vadd.f32 %v516_v52, %v1873_v13 }
 0x136   :  { %v556_v57 = vmax.f32 %v540_v54, 0.0  ;;  %v558_v46 = vmax.f32 %v542_v39, 0.0  ;;  %v447_v54 = vadd.f32 %v431_v41, %v1830_v58 }
 0x137   :  { %v548_v63 = vmax.f32 %v532_v56, 0.0 }
 0x138   :  { %v1975_v0 = vpack.c.bf16 %v556_v57, %v555_v60  ;;  %1094 = vperm.xlu0 %1413, %v1020_v53  }
 0x139   :  { %v1977_v13 = vpack.c.bf16 %v548_v63, %v547_v7  ;;  %1044 = vperm.xlu2 %1412, %v1010_v8   ;;  %790 = vperm.xlu1 %1414, %v632_v20   ;;  %v506_v49 = vpop.permute.xlu0 %505  ;;  %v1025_v20 = vld [vmem:[%s2301_s5 + $0x78] sm:$0xff]  ;;  %v1024_v7 = vld [vmem:[%s2301_s5 + $0x70] sm:$0xff] }
 0x13a   :  { %v474_v26 = vpop.permute.xlu1 %473  ;;  %v527_v51 = vmul.f32 %v1913_v21, %v506_v49  ;;  %v1028_v63 = vld [vmem:[%s2301_s5 + $0x90] sm:$0xff] }
 0x13b   :  { %v519_v2 = vmul.f32 %v1913_v21, %v474_v26  ;;  %v1027_v26 = vld [vmem:[%s2301_s5 + $0x88] sm:$0xff]  ;;  %v2131_v25 = vpop.permute.xlu2 %635 }
 0x13c   :  { %v543_v56 = vadd.f32 %v527_v51, %v446_v16 }
 0x13d   :  { %v535_v19 = vadd.f32 %v519_v2, %v1836_v5  ;;  %v1030_v2 = vld [vmem:[%s2301_s5 + $0xa0] sm:$0xff] }
 0x13e   :  { %v559_v57 = vmax.f32 %v543_v56, 0.0 }
 0x13f   :  { %v551_v22 = vmax.f32 %v535_v19, 0.0  ;;  %v1034_v19 = vld [vmem:[%s2301_s5 + $0xc0] sm:$0xff] }
 0x140   :  { %1109 = vperm.xlu0 %1413, %v1023_v4   ;;  %v1355_v4 = vld [vmem:[%s2299_s3] sm:$0xff] }
 0x141   :  { %v1994_v5 = vpack.c.bf16 %v552_v17, %v551_v22  ;;  %1059 = vperm.xlu2 %1412, %v1013_v35   ;;  %1054 = vperm.xlu1 %1414, %v1012_v31   ;;  %v1363_v35 = vld [vmem:[%s2299_s3 + $0x40] sm:$0xff]  ;;  %v1036_v17 = vld [vmem:[%s2301_s5 + $0xd0] sm:$0xff]  ;;  %v1039_v22 = vld [vmem:[%s2301_s5 + $0xe8] sm:$0xff] }
 0x142   :  { %v486_v24 = vpop.permute.xlu1 %485  ;;  %v1367_v31 = vld [vmem:[%s2299_s3 + $0x60] sm:$0xff] }
 0x143   :  { %v522_v10 = vmul.f32 %v1913_v21, %v486_v24  ;;  %v1364_v24 = vld [vmem:[%s2299_s3 + $0x48] sm:$0xff] }
 0x145   :  { %v538_v27 = vadd.f32 %v522_v10, %v441_v62  ;;  %v1368_v62 = vld [vmem:[%s2299_s3 + $0x68] sm:$0xff]  ;;  %v1357_v10 = vld [vmem:[%s2299_s3 + $0x10] sm:$0xff] }
 0x147   :  { %v554_v47 = vmax.f32 %v538_v27, 0.0  ;;  %v1365_v27 = vld [vmem:[%s2299_s3 + $0x50] sm:$0xff] }
 0x148   :  { %1124 = vperm.xlu0 %1413, %v1026_v6   ;;  %v2144_v6 = vpop.permute.xlu2 %650 }
 0x149   :  { %v597_v34 = vpack.c.bf16 %v554_v47, %v553_v38  ;;  %1074 = vperm.xlu2 %1412, %v1016_v14   ;;  %1069 = vperm.xlu1 %1414, %v1015_v45   ;;  %v1369_v14 = vld [vmem:[%s2299_s3 + $0x70] sm:$0xff]  ;;  %v2149_v45 = vpop.permute.xlu0 %640  ;;  %v1358_v47 = vld [vmem:[%s2299_s3 + $0x18] sm:$0xff] }
 0x14a   :  { %v498_v40 = vpop.permute.xlu1 %497 }
 0x14b   :  { %v525_v42 = vmul.f32 %v1913_v21, %v498_v40  ;;  %v1370_v40 = vld [vmem:[%s2299_s3 + $0x78] sm:$0xff] }
 0x14d   :  { %v541_v48 = vadd.f32 %v525_v42, %v444_v9 }
 0x14f   :  { %v557_v1 = vmax.f32 %v541_v48, 0.0 }
 0x150   :  { %1139 = vperm.xlu0 %1413, %v1029_v55   ;;  %v2153_v38 = vpop.permute.xlu2 %660 }
 0x151   :  { %v599_v23 = vpack.c.bf16 %v558_v46, %v557_v1  ;;  %1089 = vperm.xlu2 %1412, %v1019_v36   ;;  %1084 = vperm.xlu1 %1414, %v1018_v59   ;;  %v2155_v50 = vpop.permute.xlu0 %665 }
 0x152   :  { %v510_v52 = vpop.permute.xlu1 %509 }
 0x153   :  { %v528_v53 = vmul.f32 %v1913_v21, %v510_v52  ;;  %v1035_v21 = vld [vmem:[%s2301_s5 + $0xc8] sm:$0xff] }
 0x155   :  { %v544_v60 = vadd.f32 %v528_v53, %v447_v54 }
 0x157   :  { %v560_v8 = vmax.f32 %v544_v60, 0.0 }
 0x158   :  { %1154 = vperm.xlu0 %1413, %v1032_v28   ;;  %v2171_v39 = vpop.permute.xlu2 %675 }
 0x159   :  { %v600_v58 = vpack.c.bf16 %v560_v8, %v559_v57  ;;  %1104 = vperm.xlu2 %1412, %v1022_v30   ;;  %1099 = vperm.xlu1 %1414, %v1021_v33   ;;  %v2173_v42 = vpop.permute.xlu0 %680 }
 0x15b   :  { %889 = vmatpush.bf16.msra.mxu0 %v600_v58  ;;  %1371 = vmatpush.bf16.msra.mxu1 %v600_v58  ;;  %v2136_v11 = vpop.permute.xlu1 %645 }
 0x15c   :  { %1372 = vmatpush.bf16.msra.mxu2 %v600_v58  ;;  %1373 = vmatpush.bf16.msra.mxu3 %v600_v58 }
 0x15f   :  { %890 = vmatpush.bf16.msra.mxu0 %v599_v23  ;;  %1374 = vmatpush.bf16.msra.mxu1 %v599_v23 }
 0x160   :  { %1375 = vmatpush.bf16.msra.mxu2 %v599_v23  ;;  %1376 = vmatpush.bf16.msra.mxu3 %v599_v23  ;;  %v2177_v37 = vpop.permute.xlu2 %690 }
 0x161   :  { %1169 = vperm.xlu0 %1413, %v1035_v21   ;;  %1119 = vperm.xlu2 %1412, %v1025_v20   ;;  %v2179_v48 = vpop.permute.xlu0 %695 }
 0x162   :  { %1114 = vperm.xlu1 %1414, %v1024_v7  }
 0x163   :  { %891 = vmatpush.bf16.msra.mxu0 %v1975_v0  ;;  %1377 = vmatpush.bf16.msra.mxu1 %v1975_v0  ;;  %v2151_v32 = vpop.permute.xlu1 %655 }
 0x164   :  { %1378 = vmatpush.bf16.msra.mxu2 %v1975_v0  ;;  %1379 = vmatpush.bf16.msra.mxu3 %v1975_v0  ;;  %v1041_v0 = vld [vmem:[%s2301_s5 + $0xf8] sm:$0xff] }
 0x167   :  { %892 = vmatpush.bf16.msra.mxu0 %v597_v34  ;;  %1380 = vmatpush.bf16.msra.mxu1 %v597_v34 }
 0x168   :  { %1381 = vmatpush.bf16.msra.mxu2 %v597_v34  ;;  %1382 = vmatpush.bf16.msra.mxu3 %v597_v34  ;;  %v1366_v34 = vld [vmem:[%s2299_s3 + $0x58] sm:$0xff]  ;;  %v2183_v36 = vpop.permute.xlu2 %705 }
 0x169   :  { %1184 = vperm.xlu0 %1413, %v1038_v3   ;;  %1134 = vperm.xlu2 %1412, %v1028_v63   ;;  %v2185_v59 = vpop.permute.xlu0 %710 }
 0x16a   :  { %1129 = vperm.xlu1 %1414, %v1027_v26  }
 0x16b   :  { %893 = vmatpush.bf16.msra.mxu0 %v1994_v5  ;;  %1383 = vmatpush.bf16.msra.mxu1 %v1994_v5  ;;  %v2169_v9 = vpop.permute.xlu1 %670 }
 0x16c   :  { %1384 = vmatpush.bf16.msra.mxu2 %v1994_v5  ;;  %1385 = vmatpush.bf16.msra.mxu3 %v1994_v5  ;;  %v1360_v5 = vld [vmem:[%s2299_s3 + $0x28] sm:$0xff] }
 0x16f   :  { %894 = vmatpush.bf16.msra.mxu0 %v1939_v61  ;;  %1386 = vmatpush.bf16.msra.mxu1 %v1939_v61 }
 0x170   :  { %1387 = vmatpush.bf16.msra.mxu2 %v1939_v61  ;;  %1388 = vmatpush.bf16.msra.mxu3 %v1939_v61  ;;  %v1033_v61 = vld [vmem:[%s2301_s5 + $0xb8] sm:$0xff]  ;;  %v2189_v46 = vpop.permute.xlu2 %720 }
 0x171   :  { %1199 = vperm.xlu0 %1413, %v1041_v0   ;;  %1149 = vperm.xlu2 %1412, %v1031_v43   ;;  %v2191_v51 = vpop.permute.xlu0 %725 }
 0x172   :  { %1144 = vperm.xlu1 %1414, %v1030_v2  }
 0x173   :  { %895 = vmatpush.bf16.msra.mxu0 %v1977_v13  ;;  %1389 = vmatpush.bf16.msra.mxu1 %v1977_v13  ;;  %v2175_v49 = vpop.permute.xlu1 %685 }
 0x174   :  { %1390 = vmatpush.bf16.msra.mxu2 %v1977_v13  ;;  %1391 = vmatpush.bf16.msra.mxu3 %v1977_v13  ;;  %v1359_v13 = vld [vmem:[%s2299_s3 + $0x20] sm:$0xff] }
 0x177   :  { %896 = vmatpush.bf16.msra.mxu0 %v1958_v18  ;;  %1392 = vmatpush.bf16.msra.mxu1 %v1958_v18 }
 0x178   :  { %1393 = vmatpush.bf16.msra.mxu2 %v1958_v18  ;;  %1394 = vmatpush.bf16.msra.mxu3 %v1958_v18  ;;  %v1040_v18 = vld [vmem:[%s2301_s5 + $0xf0] sm:$0xff]  ;;  %v2195_v16 = vpop.permute.xlu2 %735 }
 0x179   :  { %1164 = vperm.xlu2 %1412, %v1034_v19   ;;  %v2197_v23 = vpop.permute.xlu0 %740 }
 0x17a   :  { %1159 = vperm.xlu1 %1414, %v1033_v61   ;;  %897 = vmatmul.bf16.vlgmr.msra.gmra.mxu0 %v1355_v4 }
 0x17b   :  { %917 = vmatmul.bf16.vlgmr.msra.gmra.mxu1 %v1359_v13  ;;  %937 = vmatmul.bf16.vlgmr.msra.gmra.mxu2 %v1363_v35  ;;  %v2181_v55 = vpop.permute.xlu1 %700 }
 0x17c   :  { %957 = vmatmul.bf16.vlgmr.msra.gmra.mxu3 %v1367_v31 }
 0x180   :  { %v2201_v54 = vpop.permute.xlu2 %750 }
 0x181   :  { %1179 = vperm.xlu2 %1412, %v1037_v15   ;;  %2304 = vst [vmem:[#allocation6_spill] sm:$0xff] %v2201_v54  ;;  %v2203_v56 = vpop.permute.xlu0 %755 }
 0x182   :  { %1174 = vperm.xlu1 %1414, %v1036_v17   ;;  %2305 = vst [vmem:[#allocation7_spill] sm:$0xff] %v2203_v56 }
 0x183   :  { %v2187_v41 = vpop.permute.xlu1 %715 }
 0x188   :  { %v2207_v60 = vpop.permute.xlu2 %765 }
 0x189   :  { %1194 = vperm.xlu2 %1412, %v1040_v18   ;;  %2307 = vst [vmem:[#allocation9_spill] sm:$0xff] %v2207_v60  ;;  %v2209_v28 = vpop.permute.xlu0 %770 }
 0x18a   :  { %1189 = vperm.xlu1 %1414, %v1039_v22   ;;  %902 = vmatmul.bf16.gmra.mxu0 %v1356_v29  ;;  %2308 = vst [vmem:[#allocation10_spill] sm:$0xff] %v2209_v28 }
 0x18b   :  { %922 = vmatmul.bf16.gmra.mxu1 %v1360_v5  ;;  %942 = vmatmul.bf16.gmra.mxu2 %v1364_v24  ;;  %v2193_v1 = vpop.permute.xlu1 %730 }
 0x18c   :  { %962 = vmatmul.bf16.gmra.mxu3 %v1368_v62 }
 0x190   :  { %v2213_v33 = vpop.permute.xlu2 %780 }
 0x191   :  { %2310 = vst [vmem:[#allocation12_spill] sm:$0xff] %v2213_v33  ;;  %v2215_v57 = vpop.permute.xlu0 %785 }
 0x192   :  { %2311 = vst [vmem:[#allocation13_spill] sm:$0xff] %v2215_v57 }
 0x193   :  { %v2199_v52 = vpop.permute.xlu1 %745 }
 0x198   :  { %v1045_v20 = vpop.permute.xlu2 %1044 }
 0x199   :  { %v1050_v7 = vpop.permute.xlu0 %1049 }
 0x19a   :  { %907 = vmatmul.bf16.gmra.mxu0 %v1357_v10 }
 0x19b   :  { %927 = vmatmul.bf16.gmra.mxu1 %v1361_v12  ;;  %947 = vmatmul.bf16.gmra.mxu2 %v1365_v27  ;;  %v2205_v53 = vpop.permute.xlu1 %760 }
 0x19c   :  { %967 = vmatmul.bf16.gmra.mxu3 %v1369_v14  ;;  %2306 = vst [vmem:[#allocation8_spill] sm:$0xff] %v2205_v53 }
 0x1a0   :  { %v1060_v43 = vpop.permute.xlu2 %1059 }
 0x1a1   :  { %v1065_v19 = vpop.permute.xlu0 %1064 }
 0x1a3   :  { %v2211_v30 = vpop.permute.xlu1 %775 }
 0x1a4   :  { %2309 = vst [vmem:[#allocation11_spill] sm:$0xff] %v2211_v30 }
 0x1a8   :  { %v1075_v31 = vpop.permute.xlu2 %1074 }
 0x1a9   :  { %v1080_v17 = vpop.permute.xlu0 %1079 }
 0x1aa   :  { %912 = vmatmul.bf16.gmra.mxu0 %v1358_v47 }
 0x1ab   :  { %932 = vmatmul.bf16.gmra.mxu1 %v1362_v44  ;;  %952 = vmatmul.bf16.gmra.mxu2 %v1366_v34  ;;  %v2217_v21 = vpop.permute.xlu1 %790 }
 0x1ac   :  { %972 = vmatmul.bf16.gmra.mxu3 %v1370_v40  ;;  %2312 = vst [vmem:[#allocation14_spill] sm:$0xff] %v2217_v21 }
 0x1b0   :  { %v1090_v24 = vpop.permute.xlu2 %1089 }
 0x1b1   :  { %v2227_v10 = vpop.permute.xlu0 %1094 }
 0x1b3   :  { %v1055_v0 = vpop.permute.xlu1 %1054 }
 0x1b8   :  { %v2237_v33 = vpop.permute.xlu2 %1104 }
 0x1b9   :  { %v2240_v53 = vpop.permute.xlu0 %1109 }
 0x1bb   :  { %v1070_v13 = vpop.permute.xlu1 %1069 }
 0x1c3   :  { %v1085_v5 = vpop.permute.xlu1 %1084 }
 0x1cb   :  { %v1100_v57 = vpop.permute.xlu1 %1099 }
 0x1f7   :  { %v898_v8 = vpop.f32.mrf.mxu0 }
 0x1f8   :  { %v918_v58 = vpop.f32.mrf.mxu1  ;;  %v899_v47 = vadd.f32 %v898_v8, %v2131_v25 }
 0x1fa   :  { %v978_v30 = vmax.f32 %v899_v47, 0.0 }
 0x1fe   :  { %v2219_v26 = vpop.f32.mrf.mxu2 }
 0x1ff   :  { %v900_v3 = vpop.f32.mrf.mxu0  ;;  %v2223_v18 = vpop.f32.mrf.mxu3 }
 0x200   :  { %v920_v63 = vpop.f32.mrf.mxu1  ;;  %2313 = vst [vmem:[#allocation15_spill] sm:$0xff] %v2223_v18  ;;  %v901_v27 = vadd.f32 %v900_v3, %v2149_v45 }
 0x202   :  { %v979_v40 = vmax.f32 %v901_v27, 0.0 }
 0x204   :  { %v1203_v45 = vmul.f32 %v1050_v7, %v979_v40  ;;  %v1115_v7 = vpop.permute.xlu1 %1114 }
 0x206   :  { %v2221_v61 = vpop.f32.mrf.mxu2 }
 0x207   :  { %v903_v2 = vpop.f32.mrf.mxu0  ;;  %v2229_v12 = vpop.f32.mrf.mxu3 }
 0x208   :  { %v923_v4 = vpop.f32.mrf.mxu1  ;;  %2314 = vst [vmem:[#allocation16_spill] sm:$0xff] %v2229_v12  ;;  %v904_v44 = vadd.f32 %v903_v2, %v2136_v11  ;;  %v1202_v2 = vmul.f32 %v1045_v20, %v978_v30 }
 0x20a   :  { %v980_v28 = vmax.f32 %v904_v44, 0.0  ;;  %v1234_v18 = vadd.f32 %v1203_v45, %v1202_v2 }
 0x20c   :  { %v1204_v27 = vmul.f32 %v1055_v0, %v980_v28  ;;  %v1125_v0 = vpop.permute.xlu0 %1124 }
 0x20e   :  { %v2225_v29 = vpop.f32.mrf.mxu2 }
 0x20f   :  { %v905_v35 = vpop.f32.mrf.mxu0  ;;  %v2243_v11 = vpop.f32.mrf.mxu3 }
 0x210   :  { %v925_v15 = vpop.f32.mrf.mxu1  ;;  %v906_v21 = vadd.f32 %v905_v35, %v2144_v6  ;;  %2315 = vst [vmem:[#allocation17_spill] sm:$0xff] %v2243_v11 }
 0x212   :  { %v981_v3 = vmax.f32 %v906_v21, 0.0  ;;  %v1120_v21 = vpop.permute.xlu2 %1119 }
 0x214   :  { %v1205_v47 = vmul.f32 %v1060_v43, %v981_v3 }
 0x216   :  { %v2234_v34 = vpop.f32.mrf.mxu2 }
 0x217   :  { %v908_v22 = vpop.f32.mrf.mxu0  ;;  %v2251_v43 = vpop.f32.mrf.mxu3 }
 0x218   :  { %v928_v62 = vpop.f32.mrf.mxu1  ;;  %v909_v60 = vadd.f32 %v908_v22, %v2151_v32  ;;  %v1235_v32 = vadd.f32 %v1234_v18, %v1204_v27 }
 0x21a   :  { %v982_v6 = vmax.f32 %v909_v60, 0.0  ;;  %v921_v60 = vadd.f32 %v920_v63, %v2173_v42 }
 0x21c   :  { %v1206_v22 = vmul.f32 %v1065_v19, %v982_v6  ;;  %v924_v19 = vadd.f32 %v923_v4, %v2175_v49  ;;  %v1135_v49 = vpop.permute.xlu2 %1134 }
 0x21e   :  { %v2246_v56 = vpop.f32.mrf.mxu2  ;;  %v988_v42 = vmax.f32 %v924_v19, 0.0 }
 0x21f   :  { %v910_v14 = vpop.f32.mrf.mxu0  ;;  %v949_v19 = vadd.f32 %v2246_v56, %v2195_v16  ;;  %v2317_v16 = vld [vmem:[#allocation7_spill] sm:$0xff] }
 0x220   :  { %v930_v12 = vpop.f32.mrf.mxu1  ;;  %v911_v25 = vadd.f32 %v910_v14, %v2153_v38  ;;  %v919_v38 = vadd.f32 %v918_v58, %v2171_v39  ;;  %v1236_v14 = vadd.f32 %v1235_v32, %v1205_v47  ;;  %v926_v39 = vadd.f32 %v925_v15, %v2177_v37  ;;  %v2318_v56 = vld [vmem:[#allocation15_spill] sm:$0xff] }
 0x221   :  { %v931_v6 = vadd.f32 %v930_v12, %v2181_v55  ;;  %v1212_v47 = vmul.f32 %v2227_v10, %v988_v42  ;;  %v939_v55 = vadd.f32 %v2219_v26, %v2187_v41  ;;  %v2316_v42 = vld [vmem:[#allocation6_spill] sm:$0xff] }
 0x222   :  { %v983_v44 = vmax.f32 %v911_v25, 0.0  ;;  %v1237_v28 = vadd.f32 %v1236_v14, %v1206_v22  ;;  %v986_v18 = vmax.f32 %v919_v38, 0.0  ;;  %v987_v25 = vmax.f32 %v921_v60, 0.0 }
 0x223   :  { %v989_v27 = vmax.f32 %v926_v39, 0.0 }
 0x224   :  { %v1207_v40 = vmul.f32 %v1070_v13, %v983_v44  ;;  %v1210_v2 = vmul.f32 %v1085_v5, %v986_v18  ;;  %v2259_v5 = vpop.f32.mrf.mxu3  ;;  %v1150_v41 = vpop.permute.xlu2 %1149 }
 0x225   :  { %v1213_v32 = vmul.f32 %v1100_v57, %v989_v27 }
 0x226   :  { %v1238_v45 = vadd.f32 %v1237_v28, %v1207_v40 }
 0x227   :  { %v913_v8 = vpop.f32.mrf.mxu0 }
 0x228   :  { %v914_v35 = vadd.f32 %v913_v8, %v2155_v50  ;;  %v933_v11 = vpop.f32.mrf.mxu1  ;;  %v950_v8 = vpop.f32.mrf.mxu2 }
 0x229   :  { %v934_v37 = vadd.f32 %v933_v11, %v2183_v36  ;;  %v941_v36 = vadd.f32 %v2221_v61, %v2189_v46 }
 0x22a   :  { %v984_v54 = vmax.f32 %v914_v35, 0.0 }
 0x22b   :  { %v992_v22 = vmax.f32 %v934_v37, 0.0  ;;  %v995_v26 = vmax.f32 %v941_v36, 0.0 }
 0x22c   :  { %v1208_v50 = vmul.f32 %v1075_v31, %v984_v54  ;;  %v929_v54 = vadd.f32 %v928_v62, %v2179_v48  ;;  %v1211_v31 = vmul.f32 %v1090_v24, %v987_v25  ;;  %v991_v48 = vmax.f32 %v931_v6, 0.0  ;;  %v970_v46 = vpop.f32.mrf.mxu3 }
 0x22d   :  { %v1216_v60 = vmul.f32 %v1115_v7, %v992_v22 }
 0x22e   :  { %v1239_v58 = vadd.f32 %v1238_v45, %v1208_v50  ;;  %v990_v44 = vmax.f32 %v929_v54, 0.0  ;;  %v1215_v11 = vmul.f32 %v2240_v53, %v991_v48 }
 0x22f   :  { %v915_v30 = vpop.f32.mrf.mxu0 }
 0x230   :  { %v916_v20 = vadd.f32 %v915_v30, %v2169_v9  ;;  %v1130_v9 = vpop.permute.xlu1 %1129  ;;  %v935_v4 = vpop.f32.mrf.mxu1  ;;  %v1214_v12 = vmul.f32 %v2237_v33, %v990_v44  ;;  %v994_v30 = vmax.f32 %v939_v55, 0.0  ;;  %v946_v33 = vadd.f32 %v2234_v34, %v2193_v1  ;;  %v2323_v55 = vld [vmem:[#allocation10_spill] sm:$0xff] }
 0x231   :  { %v936_v24 = vadd.f32 %v935_v4, %v2185_v59  ;;  %v953_v10 = vpop.f32.mrf.mxu2  ;;  %v944_v59 = vadd.f32 %v2225_v29, %v2191_v51  ;;  %v951_v51 = vadd.f32 %v950_v8, %v2197_v23 }
 0x232   :  { %v985_v3 = vmax.f32 %v916_v20, 0.0  ;;  %v1218_v61 = vmul.f32 %v1125_v0, %v994_v30  ;;  %v997_v25 = vmax.f32 %v946_v33, 0.0  ;;  %v954_v1 = vadd.f32 %v953_v10, %v2199_v52 }
 0x233   :  { %v993_v14 = vmax.f32 %v936_v24, 0.0  ;;  %v996_v53 = vmax.f32 %v944_v59, 0.0 }
 0x234   :  { %v1209_v13 = vmul.f32 %v1080_v17, %v985_v3  ;;  %v1140_v17 = vpop.permute.xlu0 %1139  ;;  %v1219_v3 = vmul.f32 %v1130_v9, %v995_v26  ;;  %v959_v9 = vadd.f32 %v2318_v56, %v2317_v16  ;;  %v1000_v27 = vmax.f32 %v954_v1, 0.0  ;;  %v973_v6 = vpop.f32.mrf.mxu3 }
 0x235   :  { %v1217_v50 = vmul.f32 %v1120_v21, %v993_v14  ;;  %v1220_v39 = vmul.f32 %v1135_v49, %v996_v53  ;;  %v2320_v49 = vld [vmem:[#allocation16_spill] sm:$0xff]  ;;  %v2324_v14 = vld [vmem:[#allocation11_spill] sm:$0xff] }
 0x236   :  { %v1240_v63 = vadd.f32 %v1239_v58, %v1209_v13  ;;  %v998_v58 = vmax.f32 %v949_v19, 0.0  ;;  %v1221_v13 = vmul.f32 %v1140_v17, %v997_v25  ;;  %v1002_v37 = vmax.f32 %v959_v9, 0.0  ;;  %v2322_v17 = vld [vmem:[#allocation17_spill] sm:$0xff]  ;;  %v2327_v25 = vld [vmem:[#allocation14_spill] sm:$0xff] }
 0x238   :  { %v1241_v35 = vadd.f32 %v1240_v63, %v1210_v2  ;;  %v1145_v57 = vpop.permute.xlu1 %1144  ;;  %v999_v2 = vmax.f32 %v951_v51, 0.0  ;;  %v1165_v63 = vpop.permute.xlu2 %1164 }
 0x239   :  { %v955_v7 = vpop.f32.mrf.mxu2  ;;  %v1226_v36 = vmul.f32 %v1165_v63, %v1002_v37 }
 0x23a   :  { %v1242_v15 = vadd.f32 %v1241_v35, %v1211_v31  ;;  %v956_v54 = vadd.f32 %v955_v7, %v2316_v42  ;;  %v1222_v31 = vmul.f32 %v1145_v57, %v998_v58  ;;  %v2319_v35 = vld [vmem:[#allocation8_spill] sm:$0xff]  ;;  %v1223_v52 = vmul.f32 %v1150_v41, %v999_v2 }
 0x23b   :  { %v961_v4 = vadd.f32 %v2320_v49, %v2319_v35 }
 0x23c   :  { %v1243_v62 = vadd.f32 %v1242_v15, %v1212_v47  ;;  %v1155_v18 = vpop.permute.xlu0 %1154  ;;  %v1001_v47 = vmax.f32 %v956_v54, 0.0  ;;  %v2321_v15 = vld [vmem:[#allocation9_spill] sm:$0xff] }
 0x23d   :  { %v1224_v48 = vmul.f32 %v1155_v18, %v1000_v27  ;;  %v1003_v24 = vmax.f32 %v961_v4, 0.0  ;;  %v1272_v27 = vstv %s2302_s6 }
 0x23e   :  { %v1244_v38 = vadd.f32 %v1243_v62, %v1213_v32  ;;  %v964_v32 = vadd.f32 %v2322_v17, %v2321_v15 }
 0x240   :  { %v1245_v40 = vadd.f32 %v1244_v38, %v1214_v12  ;;  %v1160_v21 = vpop.permute.xlu1 %1159  ;;  %v966_v12 = vadd.f32 %v2251_v43, %v2323_v55  ;;  %v1180_v30 = vpop.permute.xlu2 %1179  ;;  %v2326_v43 = vld [vmem:[#allocation13_spill] sm:$0xff] }
 0x241   :  { %v1225_v22 = vmul.f32 %v1160_v21, %v1001_v47 }
 0x242   :  { %v1246_v28 = vadd.f32 %v1245_v40, %v1215_v11  ;;  %v1004_v11 = vmax.f32 %v964_v32, 0.0  ;;  %v969_v40 = vadd.f32 %v2259_v5, %v2324_v14 }
 0x244   :  { %v1247_v20 = vadd.f32 %v1246_v28, %v1216_v60  ;;  %v1170_v8 = vpop.permute.xlu0 %1169  ;;  %v1005_v60 = vmax.f32 %v966_v12, 0.0  ;;  %v2325_v28 = vld [vmem:[#allocation12_spill] sm:$0xff]  ;;  %v1006_v18 = vmax.f32 %v969_v40, 0.0 }
 0x245   :  { %v1227_v59 = vmul.f32 %v1170_v8, %v1003_v24  ;;  %v971_v41 = vadd.f32 %v970_v46, %v2325_v28 }
 0x246   :  { %v1248_v45 = vadd.f32 %v1247_v20, %v1217_v50  ;;  %v975_v50 = vpop.f32.mrf.mxu3  ;;  %v1229_v19 = vmul.f32 %v1180_v30, %v1005_v60 }
 0x247   :  { %v976_v51 = vadd.f32 %v975_v50, %v2327_v25 }
 0x248   :  { %v1249_v29 = vadd.f32 %v1248_v45, %v1218_v61  ;;  %v1175_v10 = vpop.permute.xlu1 %1174  ;;  %v974_v61 = vadd.f32 %v973_v6, %v2326_v43  ;;  %v1007_v45 = vmax.f32 %v971_v41, 0.0 }
 0x249   :  { %v1228_v20 = vmul.f32 %v1175_v10, %v1004_v11  ;;  %v1009_v1 = vmax.f32 %v976_v51, 0.0 }
 0x24a   :  { %v1250_v34 = vadd.f32 %v1249_v29, %v1219_v3  ;;  %v1008_v29 = vmax.f32 %v974_v61, 0.0 }
 0x24c   :  { %v1251_v0 = vadd.f32 %v1250_v34, %v1220_v39  ;;  %v1185_v33 = vpop.permute.xlu0 %1184  ;;  %v1195_v34 = vpop.permute.xlu2 %1194 }
 0x24d   :  { %v1230_v5 = vmul.f32 %v1185_v33, %v1006_v18  ;;  %v1232_v21 = vmul.f32 %v1195_v34, %v1008_v29 }
 0x24e   :  { %v1252_v23 = vadd.f32 %v1251_v0, %v1221_v13 }
 0x250   :  { %v1253_v44 = vadd.f32 %v1252_v23, %v1222_v31  ;;  %v1190_v39 = vpop.permute.xlu1 %1189 }
 0x251   :  { %v1231_v58 = vmul.f32 %v1190_v39, %v1007_v45 }
 0x252   :  { %v1254_v62 = vadd.f32 %v1253_v44, %v1223_v52 }
 0x254   :  { %v1255_v38 = vadd.f32 %v1254_v62, %v1224_v48  ;;  %v1200_v2 = vpop.permute.xlu0 %1199 }
 0x255   :  { %v1233_v0 = vmul.f32 %v1200_v2, %v1009_v1 }
 0x256   :  { %v1256_v57 = vadd.f32 %v1255_v38, %v1225_v22 }
 0x258   :  { %v1257_v26 = vadd.f32 %v1256_v57, %v1226_v36 }
 0x25a   :  { %v1258_v53 = vadd.f32 %v1257_v26, %v1227_v59 }
 0x25c   :  { %v1259_v3 = vadd.f32 %v1258_v53, %v1228_v20 }
 0x25e   :  { %v1260_v7 = vadd.f32 %v1259_v3, %v1229_v19 }
 0x260   :  { %v1261_v46 = vadd.f32 %v1260_v7, %v1230_v5 }
 0x262   :  { %v1262_v13 = vadd.f32 %v1261_v46, %v1231_v58 }
 0x264   :  { %v1263_v42 = vadd.f32 %v1262_v13, %v1232_v21 }
 0x266   :  { %v1264_v54 = vadd.f32 %v1263_v42, %v1233_v0 }
 0x268   :  { %v1265_v63 = vrot.slane %v1264_v54, 4 }
 0x26a   :  { %v1266_v16 = vadd.f32 %v1265_v63, %v1264_v54 }
 0x26c   :  { %v1267_v56 = vrot.slane %v1266_v16, 2 }
 0x26e   :  { %v1268_v9 = vadd.f32 %v1267_v56, %v1266_v16 }
 0x270   :  { %v1269_v31 = vrot.slane %v1268_v9, 1 }
 0x272   :  { %v1270_v23 = vadd.f32 %v1269_v31, %v1268_v9 }
 0x274   :  { %v1273_v8 = vadd.f32 %v1272_v27, %v1270_v23 }
 0x276   :  { %1274 = vst [vmem:[#allocation3] sm:$0x1] %v1273_v8 }
 0x277   :  { %1285 = dma.vmem_to_hbm [thread:$0]  %s1281_s18, 16, %s1283_s21, [#allocation4]  }
 0x278   :  { %1439 = dma.done.wait [#allocation4], 16  }
 0x279   :  { %1440 = vsyncadd [#allocation4], 4294967280 }
 0x27a   :  { %1290 = vsyncpa [#allocation4], 1 }

</bundles_post_ra>
